<compile_context>
chip_gen: v5e
topology: v5e:2x2
jax: 0.10.0
libtpu: 0.0.40
codegen_flags: <defaults>
</compile_context>

<pallas_src>
import functools

import jax
import jax.numpy as jnp
import numpy as np
from jax.experimental import pallas as pl
from jax.experimental.pallas import tpu as pltpu

NUM_OPS = 6  # ShiftR, ShiftG, ShiftB, RandomBrightness, RandomContrast, Solarize


def _round_up(v, m):
    return -(-v // m) * m


def _cdiv(a, b):
    return -(-a // b)


def _policy_kernel(coef_ref, x_ref, o_ref, *, operation_count):
    # coef_ref : (ROW_TILE, 4*operation_count) per-row affine table
    #            column 4*s + {0: slope_lo, 1: slope_hi, 2: bias_lo, 3: bias_hi}
    # x_ref, o_ref : (ROW_TILE, TILE_HW)
    coef = coef_ref[...]
    x = x_ref[...]
    if x.dtype != coef.dtype:
        x = x.astype(coef.dtype)
    for s in range(operation_count):          # sequential SubPolicy stages
        c = 4 * s
        slo = coef[:, c + 0:c + 1]            # (R, 1) -> broadcast over lanes
        shi = coef[:, c + 1:c + 2]
        blo = coef[:, c + 2:c + 3]
        bhi = coef[:, c + 3:c + 4]
        lt = x < 0.5
        a = jnp.where(lt, slo, shi)
        b = jnp.where(lt, blo, bhi)
        x = a * x + b                         # stage mixture (+ final normalize)
    o_ref[...] = x.astype(o_ref.dtype)


@functools.partial(jax.jit,
                   static_argnames=("temperature", "num_chunks", "operation_count"))
def policy_forward(x, stage_weights, magnitudes, mean, std, sp_idx, *,
                   temperature, num_chunks, operation_count):
    """x: (B, C, H, W) NCHW.  stage_weights: (num_sub_policies, operation_count, NUM_OPS)."""
    B, C, H, W = x.shape
    assert B % num_chunks == 0
    assert C == 3, "ShiftRGB surrogate ops assume 3-channel input"
    assert operation_count >= 1
    chunk_b = B // num_chunks
    HW = H * W
    N = B * C

    compute_dtype = jnp.bfloat16 if x.dtype == jnp.bfloat16 else jnp.float32
    itemsize = jnp.dtype(x.dtype).itemsize
    sub = max(8, 32 // itemsize)                       # sublane multiple for dtype

    # ---- SubPolicyStage.weights: softmax(_weights / temperature) over op axis
    w = jax.nn.softmax(stage_weights.astype(jnp.float32) / temperature, axis=-1)
    w_sel = w[sp_idx]                                  # (num_chunks, P, NUM_OPS)
    m = magnitudes.astype(jnp.float32)
    w0, w1, w2, w3, w4, w5 = (w_sel[..., k] for k in range(NUM_OPS))   # (nc, P)

    # ---- fuse the 6-op mixture of each stage into a per-branch affine
    #   x <  0.5 : a_lo * x + b_c       x >= 0.5 : a_hi * x + b_c + w5
    a_lo = w0 + w1 + w2 + w3 + w5 + w4 * (0.5 + m[4])                  # (nc, P)
    a_hi = a_lo - 2.0 * w5
    b_ch = (jnp.stack([w0 * m[0], w1 * m[1], w2 * m[2]], axis=-1)
            + (w3 * m[3])[..., None])                                  # (nc, P, C)

    # ---- expand to per-row coefficients for the flattened (B*C, HW) batch
    row = jnp.arange(N)
    chunk_of_row = (row // C) // chunk_b                               # (N,)
    ch_of_row = row % C                                                # (N,)
    slo = a_lo[chunk_of_row].T                                         # (P, N)
    shi = a_hi[chunk_of_row].T
    blo = b_ch[chunk_of_row, :, ch_of_row].T                           # (P, N)
    bhi = blo + w5[chunk_of_row].T

    # ---- fold Policy.normalize_ ((x - mean)/std) into the LAST stage (free)
    inv_std = (1.0 / std.astype(jnp.float32))[ch_of_row]               # (N,)
    neg_mean = (-mean.astype(jnp.float32))[ch_of_row]                  # (N,)
    is_last = (jnp.arange(operation_count) == operation_count - 1)[:, None]
    scale = jnp.where(is_last, inv_std[None, :], 1.0)                  # (P, N)
    offset = jnp.where(is_last, neg_mean[None, :] * inv_std[None, :], 0.0)
    slo = slo * scale
    shi = shi * scale
    blo = blo * scale + offset
    bhi = bhi * scale + offset

    # single merged, lane-dense coefficient table: (N, 4*P), col = 4*s + k
    coef = jnp.stack([slo, shi, blo, bhi], axis=-1)                    # (P, N, 4)
    coef = jnp.transpose(coef, (1, 0, 2)).reshape(N, 4 * operation_count)
    coef = coef.astype(compute_dtype)

    # ---- byte-budgeted, fully aligned tiling (no masked blocks anywhere)
    target_bytes = 2 * 1024 * 1024
    budget_elems = max(target_bytes // itemsize, sub * 128)
    hw_pad = _round_up(HW, 128)
    n_pad = _round_up(N, sub)

    lane_cap = max(128, (budget_elems // sub) // 128 * 128)
    tile_hw = min(hw_pad, lane_cap)
    n_hw = _cdiv(hw_pad, tile_hw)
    tile_hw = _round_up(_cdiv(hw_pad, n_hw), 128)

    row_cap = max(sub, (budget_elems // tile_hw) // sub * sub)
    row_tile = min(n_pad, row_cap)
    n_rows = _cdiv(n_pad, row_tile)
    row_tile = _round_up(_cdiv(n_pad, n_rows), sub)

    # give both v7x TensorCores parallel work even for tiny inputs
    if n_rows * n_hw == 1:
        if hw_pad >= 2 * 128:
            n_hw = 2
            tile_hw = _round_up(_cdiv(hw_pad, 2), 128)
        elif n_pad >= 2 * sub:
            n_rows = 2
            row_tile = _round_up(_cdiv(n_pad, 2), sub)

    n_final = n_rows * row_tile
    hw_final = n_hw * tile_hw

    xp = jnp.pad(x.reshape(N, HW), ((0, n_final - N), (0, hw_final - HW)))
    coef_p = jnp.pad(coef, ((0, n_final - N), (0, 0)))

    # VMEM budget: double-buffered in/out x tiles + coef tile + compute temps
    x_blk = row_tile * tile_hw * itemsize
    coef_blk = row_tile * 128 * jnp.dtype(compute_dtype).itemsize
    vmem_limit = 4 * x_blk + 2 * coef_blk + 6 * row_tile * tile_hw * 4 + (4 << 20)
    vmem_limit = int(max(16 << 20, min(48 << 20, vmem_limit)))

    kernel = functools.partial(_policy_kernel, operation_count=operation_count)
    out = pl.pallas_call(
        kernel,
        out_shape=jax.ShapeDtypeStruct((n_final, hw_final), x.dtype),
        grid=(n_rows, n_hw),
        in_specs=[
            pl.BlockSpec((row_tile, 4 * operation_count), lambda i, j: (i, 0)),
            pl.BlockSpec((row_tile, tile_hw), lambda i, j: (i, j)),
        ],
        out_specs=pl.BlockSpec((row_tile, tile_hw), lambda i, j: (i, j)),
        input_output_aliases={1: 0},
        compiler_params=pltpu.CompilerParams(
            dimension_semantics=("parallel", "parallel"),
            vmem_limit_bytes=vmem_limit),
    )(coef_p, xp)
    return out[:N, :HW].reshape(B, C, H, W)


def _reference(x, stage_weights, magnitudes, mean, std, sp_idx,
               temperature, num_chunks, operation_count):
    """Pure-JAX reference mirroring the torch forward (unfused op mixture)."""
    B, C, H, W = x.shape
    chunk_b = B // num_chunks
    w = jax.nn.softmax(stage_weights / temperature, axis=-1)
    ch = jnp.arange(C).reshape(1, C, 1, 1)
    outs = []
    for i in range(num_chunks):
        xc = x[i * chunk_b:(i + 1) * chunk_b]
        wc = w[int(sp_idx[i])]
        for s in range(operation_count):
            ops = [
                xc + magnitudes[0] * (ch == 0),
                xc + magnitudes[1] * (ch == 1),
                xc + magnitudes[2] * (ch == 2),
                xc + magnitudes[3],
                xc * (0.5 + magnitudes[4]),
                jnp.where(xc < 0.5, xc, 1.0 - xc),
            ]
            xc = sum(wc[s, k] * ops[k] for k in range(NUM_OPS))
        outs.append(xc)
    out = jnp.concatenate(outs, axis=0)
    return (out - mean.reshape(1, C, 1, 1)) / std.reshape(1, C, 1, 1)


def _run_case(key, *, B, C, H, W, num_sub_policies, operation_count,
              temperature, num_chunks):
    kx, kw, km, ki = jax.random.split(key, 4)
    x = jax.random.uniform(kx, (B, C, H, W), dtype=jnp.float32)
    stage_weights = jax.random.uniform(
        kw, (num_sub_policies, operation_count, NUM_OPS), dtype=jnp.float32)
    magnitudes = jax.random.uniform(km, (NUM_OPS,), dtype=jnp.float32)
    mean = jnp.array([0.485, 0.456, 0.406], dtype=jnp.float32)
    std = jnp.array([0.229, 0.224, 0.225], dtype=jnp.float32)
    # deterministic stand-in for `random.randrange(num_sub_policies)` per chunk
    sp_idx = jax.random.randint(ki, (num_chunks,), 0, num_sub_policies,
                                dtype=jnp.int32)

    out = policy_forward(x, stage_weights, magnitudes, mean, std, sp_idx,
                         temperature=temperature, num_chunks=num_chunks,
                         operation_count=operation_count)
    out = jax.block_until_ready(out)

    ref = _reference(x, stage_weights, magnitudes, mean, std,
                     np.asarray(sp_idx), temperature, num_chunks,
                     operation_count)
    np.testing.assert_allclose(np.asarray(out), np.asarray(ref),
                               rtol=1e-4, atol=1e-5)


if __name__ == "__main__":
    key = jax.random.PRNGKey(0)
    k1, k2 = jax.random.split(key)

    # case 1: aligned-ish small shape (HW multiple of 128, rows padded 12->16)
    _run_case(k1, B=4, C=3, H=16, W=16, num_sub_policies=3,
              operation_count=2, temperature=0.05, num_chunks=2)

    # case 2: exercises lane padding (HW=100->128) and row padding (18->32)
    _run_case(k2, B=6, C=3, H=10, W=10, num_sub_policies=4,
              operation_count=3, temperature=0.1, num_chunks=3)

    print("KERNEL_OK")
</pallas_src>

<mosaic_0001>
module attributes {stable_mosaic.version = 11 : i64} {
  func.func @_policy_kernel(%arg0: i32, %arg1: i32, %arg2: memref<16x8xf32, #tpu.memory_space<vmem>>, %arg3: memref<16x128xf32, #tpu.memory_space<vmem>>, %arg4: memref<16x128xf32, #tpu.memory_space<vmem>>) attributes {dimension_semantics = [#tpu.dimension_semantics<parallel>, #tpu.dimension_semantics<parallel>], iteration_bounds = array<i64: 1, 2>, scalar_prefetch = 0 : i64, scratch_operands = 0 : i64, tpu.core_type = #tpu.core_type<tc>, window_params = [{transform_indices = @transform_0, window_bounds = array<i64: 16, 8>}, {transform_indices = @transform_1, window_bounds = array<i64: 16, 128>}, {transform_indices = @transform_2, window_bounds = array<i64: 16, 128>}]} {
    %c0 = arith.constant 0 : index
    %c0_0 = arith.constant 0 : index
    %0 = vector.load %arg2[%c0, %c0_0] : memref<16x8xf32, #tpu.memory_space<vmem>>, vector<16x8xf32>
    %c0_1 = arith.constant 0 : index
    %c0_2 = arith.constant 0 : index
    %1 = vector.load %arg3[%c0_1, %c0_2] : memref<16x128xf32, #tpu.memory_space<vmem>>, vector<16x128xf32>
    %2 = vector.extract_strided_slice %0 {offsets = [0, 0], sizes = [16, 1], strides = [1, 1]} : vector<16x8xf32> to vector<16x1xf32>
    %3 = vector.extract_strided_slice %0 {offsets = [0, 1], sizes = [16, 1], strides = [1, 1]} : vector<16x8xf32> to vector<16x1xf32>
    %4 = vector.extract_strided_slice %0 {offsets = [0, 2], sizes = [16, 1], strides = [1, 1]} : vector<16x8xf32> to vector<16x1xf32>
    %5 = vector.extract_strided_slice %0 {offsets = [0, 3], sizes = [16, 1], strides = [1, 1]} : vector<16x8xf32> to vector<16x1xf32>
    %cst = arith.constant 5.000000e-01 : f32
    %6 = vector.broadcast %cst : f32 to vector<16x128xf32>
    %7 = arith.cmpf olt, %1, %6 : vector<16x128xf32>
    %8 = vector.shape_cast %2 : vector<16x1xf32> to vector<16x1xf32>
    %9 = vector.broadcast %8 : vector<16x1xf32> to vector<16x128xf32>
    %10 = vector.shape_cast %3 : vector<16x1xf32> to vector<16x1xf32>
    %11 = vector.broadcast %10 : vector<16x1xf32> to vector<16x128xf32>
    %12 = arith.select %7, %9, %11 : vector<16x128xi1>, vector<16x128xf32>
    %13 = vector.shape_cast %4 : vector<16x1xf32> to vector<16x1xf32>
    %14 = vector.broadcast %13 : vector<16x1xf32> to vector<16x128xf32>
    %15 = vector.shape_cast %5 : vector<16x1xf32> to vector<16x1xf32>
    %16 = vector.broadcast %15 : vector<16x1xf32> to vector<16x128xf32>
    %17 = arith.select %7, %14, %16 : vector<16x128xi1>, vector<16x128xf32>
    %18 = arith.mulf %12, %1 : vector<16x128xf32>
    %19 = arith.addf %18, %17 : vector<16x128xf32>
    %20 = vector.extract_strided_slice %0 {offsets = [0, 4], sizes = [16, 1], strides = [1, 1]} : vector<16x8xf32> to vector<16x1xf32>
    %21 = vector.extract_strided_slice %0 {offsets = [0, 5], sizes = [16, 1], strides = [1, 1]} : vector<16x8xf32> to vector<16x1xf32>
    %22 = vector.extract_strided_slice %0 {offsets = [0, 6], sizes = [16, 1], strides = [1, 1]} : vector<16x8xf32> to vector<16x1xf32>
    %23 = vector.extract_strided_slice %0 {offsets = [0, 7], sizes = [16, 1], strides = [1, 1]} : vector<16x8xf32> to vector<16x1xf32>
    %cst_3 = arith.constant 5.000000e-01 : f32
    %24 = vector.broadcast %cst_3 : f32 to vector<16x128xf32>
    %25 = arith.cmpf olt, %19, %24 : vector<16x128xf32>
    %26 = vector.shape_cast %20 : vector<16x1xf32> to vector<16x1xf32>
    %27 = vector.broadcast %26 : vector<16x1xf32> to vector<16x128xf32>
    %28 = vector.shape_cast %21 : vector<16x1xf32> to vector<16x1xf32>
    %29 = vector.broadcast %28 : vector<16x1xf32> to vector<16x128xf32>
    %30 = arith.select %25, %27, %29 : vector<16x128xi1>, vector<16x128xf32>
    %31 = vector.shape_cast %22 : vector<16x1xf32> to vector<16x1xf32>
    %32 = vector.broadcast %31 : vector<16x1xf32> to vector<16x128xf32>
    %33 = vector.shape_cast %23 : vector<16x1xf32> to vector<16x1xf32>
    %34 = vector.broadcast %33 : vector<16x1xf32> to vector<16x128xf32>
    %35 = arith.select %25, %32, %34 : vector<16x128xi1>, vector<16x128xf32>
    %36 = arith.mulf %30, %19 : vector<16x128xf32>
    %37 = arith.addf %36, %35 : vector<16x128xf32>
    %c0_4 = arith.constant 0 : index
    %c0_5 = arith.constant 0 : index
    %38 = vector.load %arg4[%c0_4, %c0_5] : memref<16x128xf32, #tpu.memory_space<vmem>>, vector<16x128xf32>
    tpu.vector_store %arg4[%c0_4, %c0_5], %37 {strides = array<i32>} : memref<16x128xf32, #tpu.memory_space<vmem>>, vector<16x128xf32>,
    return
  }
  func.func @transform_0(%arg0: i32, %arg1: i32) -> (i32, i32) {
    %c0_i32 = arith.constant 0 : i32
    %c0_i32_0 = arith.constant 0 : i32
    return %arg0, %c0_i32 : i32, i32
  }
  func.func @transform_1(%arg0: i32, %arg1: i32) -> (i32, i32) {
    %c0_i32 = arith.constant 0 : i32
    return %arg0, %arg1 : i32, i32
  }
  func.func @transform_2(%arg0: i32, %arg1: i32) -> (i32, i32) {
    %c0_i32 = arith.constant 0 : i32
    return %arg0, %arg1 : i32, i32
  }
}

</mosaic_0001>

<bundles_post_ra>
// kernel: neg.1
= control target key start
LH: loop header
LB: loop body
LE: loop exit
PB: predicated region body
PF: predicated region fallthrough
CT: control target
= control target key end

     0   :  { %s24_s0 = inlined_call_operand.vmem [shape: f32[3], index: 0, kind: input, shape index: {}]   ;;  %s25_s1 = inlined_call_operand.vmem [shape: f32[3], index: 1, kind: output, shape index: {}]  }
   0x1   :  { %v2_v0 = vld [vmem:[%s24_s0] sm:$0x1] }
   0x2   :  { %v5_v1 = vxor.u32 2147483648, %v2_v0 }
   0x4   :  { %7 = vst [vmem:[%s25_s1] sm:$0x1] %v5_v1 }

// kernel: mul.4
= control target key start
LH: loop header
LB: loop body
LE: loop exit
PB: predicated region body
PF: predicated region fallthrough
CT: control target
= control target key end

     0   :  { %s34_s0 = inlined_call_operand.vmem [shape: f32[12], index: 0, kind: input, shape index: {}]   ;;  %s35_s1 = inlined_call_operand.vmem [shape: f32[12], index: 1, kind: input, shape index: {}]   ;;  %s36_s2 = inlined_call_operand.vmem [shape: f32[12], index: 2, kind: output, shape index: {}]  }
   0x1   :  { %v3_v0 = vld [vmem:[%s34_s0] sm:$0x1] }
   0x2   :  { %v4_v1 = vld [vmem:[%s35_s1] sm:$0x1] }
   0x3   :  { %v7_v2 = vmul.f32 %v4_v1, %v3_v0 }
   0x5   :  { %9 = vst [vmem:[%s36_s2] sm:$0x1] %v7_v2 }

// kernel: policy_forward.1
= control target key start
LH: loop header
LB: loop body
LE: loop exit
PB: predicated region body
PF: predicated region fallthrough
CT: control target
= control target key end

     0   :  { %s584_s9 = smov 0   ;;  %s586_s10 = smov 0   ;;  %s662_s0 = inlined_call_operand.vmem [shape: f32[16,8], index: 0, kind: input, shape index: {}]   ;;  %s663_s1 = inlined_call_operand.vmem [shape: f32[16,256], index: 1, kind: input, shape index: {}, may-alias: {1,2}]   ;;  %s664_s2 = inlined_call_operand.vmem [shape: f32[16,256], index: 2, kind: output, shape index: {}, may-alias: {1,2}]  }
   0x1   :  { %s588_s11 = smov 0   ;;  %s590_s12 = smov 0  }
   0x2   :  { %s592_s13 = smov 0  }
   0x3 LB: > { %s21_s14 = sadd.s32 1, %s555_s12  ;;  %s445_s15 = sadd.s32 4294967295, %s559_s13   ;;  %s559_s13 = sphi %s592_s13, %s12_s13   ;;  %s555_s12 = sphi %s590_s12, %s669_s12   ;;  %s551_s11 = sphi %s588_s11, %s668_s11   ;;  %s547_s10 = sphi %s586_s10, %s667_s10   ;;  %s543_s9 = sphi %s584_s9, %s666_s9  }
   0x4   : > { %p22_p0 = scmp.ge.s32.totalorder %s21_s14, 2  ;;  %p66_p1 = scmp.ne.s32.totalorder %s547_s10, %s543_s9 }
   0x5   : > { %p67_p2 = scmp.eq.s32.totalorder %s559_s13, 0  ;;  %p98_p4 = scmp.eq.s32.totalorder %s445_s15, 1 }
   0x6   : > { %s671_s14 = smov (%p22_p0, %s21_s14), 0  ;;  %s59_s17 = sadd.s32 1, %s547_s10 }
   0x7   : > { %p68_p3 = por %p67_p2, %p66_p1  ;;  %s55_s16 = ssub.s32 %s555_s12, %s671_s14 }
   0x8   : > { %p57_p5 = scmp.eq.s32.totalorder %s55_s16, 0  ;;  %p619_p6 = por %p98_p4, %p66_p1 }
   0x9   : > { %p449_p7 = scmp.ge.s32.totalorder %s559_s13, 2 }
   0xa   : > { %s624_s19 = scalar_select %p57_p5, %s547_s10, %s59_s17  }
   0xb   : > { %129 = sbr.rel (%p449_p7) target bundleno = 22 (0x16), region = 20 }
  0x10   : > { %132 = sbr.rel (!%p68_p3) target bundleno = 22 (0x16), region = 24  ;;  %s134_s20 = sand.u32 (%p68_p3), 1, %s547_s10  }
  0x11   : > { %s451_s21 = sshll.u32 (%p68_p3), %s555_s12, 3  ;;  %s450_s22 = sshll.u32 (%p68_p3), %s134_s20, 4 }
  0x12   : > { %s141_s25 = scalar_lea.vmem (%p68_p3), %s663_s1, %s451_s21  ;;  %s136_s26 = scalar_lea.vmem (%p68_p3), [#allocation2], %s450_s22 }
  0x13   : > { %v172_v0 = vld [vmem:[%s141_s25] sm:$0xff] (%p68_p3)  ;;  %v174_v1 = vld [vmem:[%s141_s25 + $0x10] sm:$0xff] (%p68_p3) }
  0x14   : > { %173 = vst [vmem:[%s136_s26] sm:$0xff] (%p68_p3), %v172_v0 }
  0x15   : > { %175 = vst [vmem:[%s136_s26 + $0x8] sm:$0xff] %v174_v1 }
  0x16 PF: > { %p452_p8 = scmp.ge.s32.totalorder %s559_s13, 1  ;;  %p180_p9 = scmp.lt.s32.totalorder %s559_s13, 3 }
  0x18   : > { %p181_p10 = pnand %p452_p8, %p180_p9 }
  0x19   : > { %s187_s3 = sand.u32 (!%p181_p10), 1, %s543_s9  }
  0x1a   : > { %184 = sbr.rel (%p181_p10) target bundleno = 205 (0xcd), region = 62  ;;  %s453_s4 = sshll.u32 (!%p181_p10), %s187_s3, 4 }
  0x1b   : > { %s189_s5 = scalar_lea.vmem (!%p181_p10), [#allocation2], %s453_s4  ;;  %s211_s6 = scalar_lea.vmem (!%p181_p10), [#allocation3], %s453_s4 }
  0x1f   : > { %v220_v2 = vld [vmem:[%s662_s0] sm:$0xff]  ;;  %v561_v3 = vmov 1   ;;  %v562_v4 = vmov 0   ;;  %v563_v5 = vmov 2   ;;  %v221_v6 = vld [vmem:[%s662_s0 + $0x8] sm:$0xff]  ;;  %v564_v7 = vmov 3  }
  0x20   : > { %508 = vset.pattern.permute.xlu1 %v561_v3  ;;  %507 = vset.pattern.permute.xlu0 %v562_v4  ;;  %v565_v8 = vmov 4   ;;  %v566_v9 = vmov 5   ;;  %v567_v10 = vmov 6   ;;  %v568_v11 = vmov 7   ;;  %v223_v20 = vld [vmem:[%s189_s5 + $0x8] sm:$0xff]  ;;  %v222_v27 = vld [vmem:[%s189_s5] sm:$0xff] }
  0x21   : > { %509 = vset.pattern.permute.xlu2 %v563_v5  ;;  %237 = vperm.xlu1 %508, %v220_v2   ;;  %vm225_vm0 = vcmp.lt.f32.partialorder %v223_v20, 0.5  ;;  %vm224_vm1 = vcmp.lt.f32.partialorder %v222_v27, 0.5  ;;  %s456_s7 = sshll.u32 (%p619_p6), %s551_s11, 3 }
  0x22   : > { %228 = vperm.xlu0 %507, %v220_v2   ;;  %247 = vperm.xlu2 %509, %v220_v2   ;;  %s323_s15 = scalar_lea.vmem (%p619_p6), %s664_s2, %s456_s7 }
  0x29   : > { %241 = vperm.xlu1 %508, %v221_v6  }
  0x2a   : > { %233 = vperm.xlu0 %507, %v221_v6   ;;  %251 = vperm.xlu2 %509, %v221_v6  }
  0x31   : > { %511 = vset.pattern.permute.xlu1 %v564_v7 }
  0x32   : > { %510 = vset.pattern.permute.xlu0 %v564_v7  ;;  %512 = vset.pattern.permute.xlu2 %v565_v8 }
  0x33   : > { %259 = vperm.xlu1 %511, %v221_v6   ;;  %255 = vperm.xlu0 %510, %v220_v2  }
  0x34   : > { %271 = vperm.xlu2 %512, %v220_v2  }
  0x3b   : > { %513 = vset.pattern.permute.xlu1 %v565_v8  ;;  %515 = vset.pattern.permute.xlu0 %v566_v9 }
  0x3c   : > { %514 = vset.pattern.permute.xlu2 %v566_v9  ;;  %275 = vperm.xlu1 %513, %v221_v6  }
  0x3d   : > { %283 = vperm.xlu0 %515, %v221_v6   ;;  %279 = vperm.xlu2 %514, %v220_v2  }
  0x44   : > { %516 = vset.pattern.permute.xlu1 %v567_v10 }
  0x45   : > { %517 = vset.pattern.permute.xlu2 %v567_v10  ;;  %289 = vperm.xlu1 %516, %v220_v2  }
  0x46   : > { %293 = vperm.xlu2 %517, %v221_v6   ;;  %520 = vset.pattern.permute.xlu0 %v568_v11 }
  0x4d   : > { %518 = vset.pattern.permute.xlu1 %v568_v11 }
  0x4e   : > { %519 = vset.pattern.permute.xlu2 %v568_v11  ;;  %297 = vperm.xlu1 %518, %v220_v2  }
  0x4f   : > { %301 = vperm.xlu2 %519, %v221_v6  }
  0x7c   : > { %v248_v12 = vpop.permute.xlu2 %247 }
  0x84   : > { %v252_v13 = vpop.permute.xlu2 %251 }
  0x8e   : > { %v272_v14 = vpop.permute.xlu2 %271 }
  0x93   : > { %v238_v15 = vpop.permute.xlu1 %237 }
  0x94   : > { %v229_v16 = vpop.permute.xlu0 %228 }
  0x95   : > { %v244_v33 = vsel %vm224_vm1, %v229_v16, %v238_v15 }
  0x96   : > { %v264_v38 = vmul.f32 %v244_v33, %v222_v27 }
  0x97   : > { %v280_v17 = vpop.permute.xlu2 %279 }
  0x9b   : > { %v242_v18 = vpop.permute.xlu1 %241 }
  0x9c   : > { %v234_v19 = vpop.permute.xlu0 %233 }
  0x9d   : > { %v245_v24 = vsel %vm225_vm0, %v234_v19, %v242_v18 }
  0x9e   : > { %v265_v26 = vmul.f32 %v245_v24, %v223_v20 }
  0xa0   : > { %v294_v21 = vpop.permute.xlu2 %293 }
  0xa5   : > { %v260_v22 = vpop.permute.xlu1 %259  ;;  %v256_v23 = vpop.permute.xlu0 %255 }
  0xa6   : > { %v263_v25 = vsel %vm225_vm0, %v252_v13, %v260_v22  ;;  %v262_v36 = vsel %vm224_vm1, %v248_v12, %v256_v23 }
  0xa7   : > { %v267_v28 = vadd.f32 %v265_v26, %v263_v25  ;;  %v266_v39 = vadd.f32 %v264_v38, %v262_v36 }
  0xa9   : > { %v302_v30 = vpop.permute.xlu2 %301  ;;  %vm269_vm2 = vcmp.lt.f32.partialorder %v267_v28, 0.5  ;;  %vm268_vm3 = vcmp.lt.f32.partialorder %v266_v39, 0.5 }
  0xaa   : > { %v305_v35 = vsel %vm269_vm2, %v294_v21, %v302_v30  ;;  %v286_v41 = vsel %vm268_vm3, %v272_v14, %v280_v17 }
  0xab   : > { %v306_v43 = vmul.f32 %v286_v41, %v266_v39 }
  0xae   : > { %v276_v29 = vpop.permute.xlu1 %275 }
  0xaf   : > { %v284_v31 = vpop.permute.xlu0 %283 }
  0xb0   : > { %v287_v32 = vsel %vm269_vm2, %v276_v29, %v284_v31 }
  0xb1   : > { %v307_v34 = vmul.f32 %v287_v32, %v267_v28 }
  0xb3   : > { %v309_v37 = vadd.f32 %v307_v34, %v305_v35 }
  0xb5   : > { %311 = vst [vmem:[%s211_s6 + $0x8] sm:$0xff] %v309_v37 }
  0xb7   : > { %v290_v40 = vpop.permute.xlu1 %289 }
  0xbc   : > { %v356_v47 = vld [vmem:[%s211_s6 + $0x8] sm:$0xff] (%p619_p6) }
  0xbd   : > { %357 = vst [vmem:[%s323_s15 + $0x10] sm:$0xff] (%p619_p6), %v356_v47 }
  0xc0   : > { %v298_v42 = vpop.permute.xlu1 %297  ;;  %318 = sbr.rel (!%p619_p6) target bundleno = 205 (0xcd), region = 70 }
  0xc1   : > { %v304_v44 = vsel %vm268_vm3, %v290_v40, %v298_v42 }
  0xc2   : > { %v308_v45 = vadd.f32 %v306_v43, %v304_v44 }
  0xc4   : > { %310 = vst [vmem:[%s211_s6] sm:$0xff] %v308_v45 }
  0xcb   : > { %v354_v46 = vld [vmem:[%s211_s6] sm:$0xff] }
  0xcc   : > { %355 = vst [vmem:[%s323_s15] sm:$0xff] %v354_v46 }
  0xcd PF: > { %s12_s13 = sadd.s32 1, %s559_s13   ;;  %s666_s9 = smov %s547_s10 }
  0xce   : > { %p9_p11 = scmp.ge.s32.totalorder %s12_s13, 4   ;;  %s667_s10 = smov %s624_s19 }
  0xcf   : > { %s668_s11 = smov %s555_s12  ;;  %s669_s12 = smov %s671_s14 }
  0xd0   :  { %11 = sbr.rel (!%p9_p11) target bundleno = 3 (0x3), region = 142 }

</bundles_post_ra>
